<compile_context>
chip_gen: v5e
topology: v5e:2x2
jax: 0.10.0
libtpu: 0.0.40
codegen_flags: <defaults>
</compile_context>

<pallas_src>
import jax
import jax.numpy as jnp
from jax.experimental import pallas as pl
from jax.experimental.pallas import tpu as pltpu


def _round_up(n, m):
    return ((n + m - 1) // m) * m


def _choose_batch_tile(B, tb_req):
    """Lane-aligned batch tile; >=2 grid steps for v7x when B is big enough."""
    full = _round_up(B, 128)
    tb = min(max(128, _round_up(tb_req, 128)), full)
    if B >= 2048:
        # v7x has 2 TensorCores sharing the "parallel" grid axis: keep at
        # least 2 grid steps, but never shrink tiles below 1024 lanes
        # (per-grid-step overhead ~0.35 us).
        half = _round_up(pl.cdiv(B, 2), 128)
        tb = min(tb, max(half, 1024))
    return tb


def mlp_kernel(x_ref, w1t_ref, b1_ref, w2_ref, b2_ref, o_ref):
    # x_ref:   [3,  TB]   (batch on lanes)
    # w1t_ref: [64, 3]    (Linear(3,64) weight, transposed to [out, in])
    # b1_ref:  [64, 1]
    # w2_ref:  [64, 1]    (Linear(64,1) weight as a column)
    # b2_ref:  [1, 1]     (SMEM scalar)
    # o_ref:   [1,  TB]   (lane-dense output)
    tb = x_ref.shape[1]
    lb = 256 if tb % 256 == 0 else 128     # register-friendly lane chunk
    n_chunks = tb // lb

    # Hoisted, resident operands (loaded once per grid step).
    w1t = w1t_ref[...]                     # [64, 3]
    w1c0 = w1t[:, 0:1]                     # [64, 1]
    w1c1 = w1t[:, 1:2]
    w1c2 = w1t[:, 2:3]
    b1 = b1_ref[...]                       # [64, 1]
    w2 = w2_ref[...]                       # [64, 1]
    b2 = b2_ref[0, 0]                      # scalar from SMEM

    # Static (trace-time) loop over lane chunks: each chunk's [64, lb] hidden
    # tile stays in vregs instead of spilling a full [64, tb] intermediate to
    # VMEM and reloading it (binding vst-slot cost on v5e).
    for j in range(n_chunks):
        c0 = j * lb
        xj = x_ref[:, c0:c0 + lb]                          # [3, lb]

        # Layer 1 on the VPU: h[f, b] = sum_k w1t[f, k] * x[k, b] + b1[f]
        # (Mosaic should CSE the x-row sublane broadcasts across the 8 feature
        #  sublane groups; if a bundle dump shows re-emission, hoist them.)
        h = (w1c0 * xj[0:1, :]
             + w1c1 * xj[1:2, :]
             + w1c2 * xj[2:3, :]
             + b1)                                         # [64, lb]
        h = jnp.maximum(h, 0.0)                            # ReLU

        # Layer 2: VPU multiply + sublane (XLU) reduction, no MXU round trip.
        yj = jnp.sum(h * w2, axis=0, keepdims=True) + b2   # [1, lb]
        o_ref[:, c0:c0 + lb] = yj.astype(o_ref.dtype)


def neural_network_forward(x, w1, b1, w2, b2, *, tb=8192, x_transposed=False):
    """Forward pass of Linear(3,64) -> ReLU -> Linear(64,1).

    x:  [B, 3]  (or [3, B] with x_transposed=True to skip the wrapper x.T)
    w1: [3, 64]   b1: [64]   w2: [64, 1]   b2: [1]
    Returns [B, 1].
    """
    if x_transposed:
        xT = x                              # [3, B]  fast path: no HBM relayout
    else:
        # Produce x feature-major upstream when possible to skip this copy.
        xT = x.T                            # [3, B]
    B = xT.shape[1]

    w1T = w1.T                              # [64, 3]  (tiny, one-time)
    b1c = b1.reshape(64, 1)                 # [64, 1]
    w2c = w2.reshape(64, 1)                 # [64, 1]
    b2s = b2.reshape(1, 1)                  # [1, 1]  -> SMEM scalar

    tb = _choose_batch_tile(B, tb)
    grid = (pl.cdiv(B, tb),)                # ragged tail handled by Pallas masking

    yT = pl.pallas_call(
        mlp_kernel,
        out_shape=jax.ShapeDtypeStruct((1, B), jnp.float32),
        grid_spec=pltpu.PrefetchScalarGridSpec(
            num_scalar_prefetch=0,
            grid=grid,
            in_specs=[
                pl.BlockSpec((3, tb), lambda i: (0, i)),      # x tile
                pl.BlockSpec((64, 3), lambda i: (0, 0)),      # w1^T (resident)
                pl.BlockSpec((64, 1), lambda i: (0, 0)),      # b1
                pl.BlockSpec((64, 1), lambda i: (0, 0)),      # w2
                pl.BlockSpec((1, 1), lambda i: (0, 0),
                             memory_space=pltpu.SMEM),        # b2 scalar
            ],
            out_specs=pl.BlockSpec((1, tb), lambda i: (0, i)),
        ),
        compiler_params=pltpu.CompilerParams(
            dimension_semantics=("parallel",)),
    )(xT, w1T, b1c, w2c, b2s)

    return yT.reshape(B, 1)                 # free contiguous reshape to [B, 1]


def init_params(key):
    # Deterministic init mimicking PyTorch's default Linear init:
    # U(-1/sqrt(fan_in), +1/sqrt(fan_in)) for weights and biases.
    k1, k2, k3, k4 = jax.random.split(key, 4)
    lim1 = 1.0 / jnp.sqrt(3.0)
    lim2 = 1.0 / jnp.sqrt(64.0)
    w1 = jax.random.uniform(k1, (3, 64), jnp.float32, -lim1, lim1)
    b1 = jax.random.uniform(k2, (64,), jnp.float32, -lim1, lim1)
    w2 = jax.random.uniform(k3, (64, 1), jnp.float32, -lim2, lim2)
    b2 = jax.random.uniform(k4, (1,), jnp.float32, -lim2, lim2)
    return w1, b1, w2, b2


if __name__ == "__main__":
    key = jax.random.PRNGKey(0)
    k_params, k_x1, k_x2 = jax.random.split(key, 3)
    w1, b1, w2, b2 = init_params(k_params)

    def ref_fwd(xx):
        return jnp.maximum(xx @ w1 + b1, 0.0) @ w2 + b2

    # Case 1: tiny natural-layout batch (exercises the ragged single tile).
    x1 = jax.random.normal(k_x1, (8, 3), jnp.float32)
    out1 = jax.block_until_ready(neural_network_forward(x1, w1, b1, w2, b2))
    assert out1.shape == (8, 1)
    assert jnp.allclose(out1, ref_fwd(x1), atol=1e-5, rtol=1e-5)

    # Case 2: ragged batch through the transposed fast path (no wrapper x.T
    # inside the forward) — exercises the in-kernel lane-chunk loop + masked
    # writeback of the partial output block.
    x2 = jax.random.normal(k_x2, (300, 3), jnp.float32)
    out2 = jax.block_until_ready(
        neural_network_forward(x2.T, w1, b1, w2, b2, x_transposed=True))
    assert out2.shape == (300, 1)
    assert jnp.allclose(out2, ref_fwd(x2), atol=1e-5, rtol=1e-5)

    print("KERNEL_OK")
</pallas_src>

<mosaic_0001>
module attributes {stable_mosaic.version = 11 : i64} {
  func.func @mlp_kernel(%arg0: i32, %arg1: memref<3x128xf32, #tpu.memory_space<vmem>>, %arg2: memref<64x3xf32, #tpu.memory_space<vmem>>, %arg3: memref<64x1xf32, #tpu.memory_space<vmem>>, %arg4: memref<64x1xf32, #tpu.memory_space<vmem>>, %arg5: memref<1x1xf32, #tpu.memory_space<smem>>, %arg6: memref<1x128xf32, #tpu.memory_space<vmem>>) attributes {dimension_semantics = [#tpu.dimension_semantics<parallel>], iteration_bounds = array<i64: 1>, scalar_prefetch = 0 : i64, scratch_operands = 0 : i64, tpu.core_type = #tpu.core_type<tc>, window_params = [{transform_indices = @transform_0, window_bounds = array<i64: 3, 128>}, {pipeline_mode = #tpu.pipeline_mode<synchronous>, transform_indices = @transform_1, window_bounds = array<i64: 64, 3>}, {pipeline_mode = #tpu.pipeline_mode<synchronous>, transform_indices = @transform_2, window_bounds = array<i64: 64, 1>}, {pipeline_mode = #tpu.pipeline_mode<synchronous>, transform_indices = @transform_3, window_bounds = array<i64: 64, 1>}, {transform_indices = @transform_4, window_bounds = array<i64: 1, 1>}, {transform_indices = @transform_5, window_bounds = array<i64: 1, 128>}]} {
    %c0 = arith.constant 0 : index
    %c0_0 = arith.constant 0 : index
    %0 = vector.load %arg2[%c0, %c0_0] : memref<64x3xf32, #tpu.memory_space<vmem>>, vector<64x3xf32>
    %1 = vector.extract_strided_slice %0 {offsets = [0, 0], sizes = [64, 1], strides = [1, 1]} : vector<64x3xf32> to vector<64x1xf32>
    %2 = vector.extract_strided_slice %0 {offsets = [0, 1], sizes = [64, 1], strides = [1, 1]} : vector<64x3xf32> to vector<64x1xf32>
    %3 = vector.extract_strided_slice %0 {offsets = [0, 2], sizes = [64, 1], strides = [1, 1]} : vector<64x3xf32> to vector<64x1xf32>
    %c0_1 = arith.constant 0 : index
    %c0_2 = arith.constant 0 : index
    %4 = vector.load %arg3[%c0_1, %c0_2] : memref<64x1xf32, #tpu.memory_space<vmem>>, vector<64x1xf32>
    %c0_3 = arith.constant 0 : index
    %c0_4 = arith.constant 0 : index
    %5 = vector.load %arg4[%c0_3, %c0_4] : memref<64x1xf32, #tpu.memory_space<vmem>>, vector<64x1xf32>
    %c0_5 = arith.constant 0 : index
    %c0_6 = arith.constant 0 : index
    %6 = memref.load %arg5[%c0_5, %c0_6] : memref<1x1xf32, #tpu.memory_space<smem>>
    %c0_7 = arith.constant 0 : index
    %c0_8 = arith.constant 0 : index
    %7 = vector.load %arg1[%c0_7, %c0_8] : memref<3x128xf32, #tpu.memory_space<vmem>>, vector<3x128xf32>
    %8 = vector.extract_strided_slice %7 {offsets = [0, 0], sizes = [1, 128], strides = [1, 1]} : vector<3x128xf32> to vector<1x128xf32>
    %9 = vector.broadcast %1 : vector<64x1xf32> to vector<64x128xf32>
    %10 = vector.broadcast %8 : vector<1x128xf32> to vector<64x128xf32>
    %11 = arith.mulf %9, %10 : vector<64x128xf32>
    %12 = vector.extract_strided_slice %7 {offsets = [1, 0], sizes = [1, 128], strides = [1, 1]} : vector<3x128xf32> to vector<1x128xf32>
    %13 = vector.broadcast %2 : vector<64x1xf32> to vector<64x128xf32>
    %14 = vector.broadcast %12 : vector<1x128xf32> to vector<64x128xf32>
    %15 = arith.mulf %13, %14 : vector<64x128xf32>
    %16 = arith.addf %11, %15 : vector<64x128xf32>
    %17 = vector.extract_strided_slice %7 {offsets = [2, 0], sizes = [1, 128], strides = [1, 1]} : vector<3x128xf32> to vector<1x128xf32>
    %18 = vector.broadcast %3 : vector<64x1xf32> to vector<64x128xf32>
    %19 = vector.broadcast %17 : vector<1x128xf32> to vector<64x128xf32>
    %20 = arith.mulf %18, %19 : vector<64x128xf32>
    %21 = arith.addf %16, %20 : vector<64x128xf32>
    %22 = vector.broadcast %4 : vector<64x1xf32> to vector<64x128xf32>
    %23 = arith.addf %21, %22 : vector<64x128xf32>
    %cst = arith.constant 0.000000e+00 : f32
    %24 = vector.broadcast %cst : f32 to vector<64x128xf32>
    %25 = arith.maximumf %23, %24 : vector<64x128xf32>
    %26 = vector.broadcast %5 : vector<64x1xf32> to vector<64x128xf32>
    %27 = arith.mulf %25, %26 : vector<64x128xf32>
    %cst_9 = arith.constant dense<0.000000e+00> : vector<128xf32>
    %28 = vector.multi_reduction <add>, %27, %cst_9 [0] : vector<64x128xf32> to vector<128xf32>
    %29 = vector.shape_cast %28 : vector<128xf32> to vector<1x128xf32>
    %30 = vector.broadcast %6 : f32 to vector<1x128xf32>
    %31 = arith.addf %29, %30 : vector<1x128xf32>
    %c0_10 = arith.constant 0 : index
    %c0_11 = arith.constant 0 : index
    %32 = vector.load %arg6[%c0_10, %c0_11] : memref<1x128xf32, #tpu.memory_space<vmem>>, vector<1x128xf32>
    tpu.vector_store %arg6[%c0_10, %c0_11], %31 {strides = array<i32>} : memref<1x128xf32, #tpu.memory_space<vmem>>, vector<1x128xf32>,
    return
  }
  func.func @transform_0(%arg0: i32) -> (i32, i32) {
    %c0_i32 = arith.constant 0 : i32
    %c0_i32_0 = arith.constant 0 : i32
    return %c0_i32, %arg0 : i32, i32
  }
  func.func @transform_1(%arg0: i32) -> (i32, i32) {
    %c0_i32 = arith.constant 0 : i32
    %c0_i32_0 = arith.constant 0 : i32
    %c0_i32_1 = arith.constant 0 : i32
    return %c0_i32, %c0_i32_0 : i32, i32
  }
  func.func @transform_2(%arg0: i32) -> (i32, i32) {
    %c0_i32 = arith.constant 0 : i32
    %c0_i32_0 = arith.constant 0 : i32
    %c0_i32_1 = arith.constant 0 : i32
    return %c0_i32, %c0_i32_0 : i32, i32
  }
  func.func @transform_3(%arg0: i32) -> (i32, i32) {
    %c0_i32 = arith.constant 0 : i32
    %c0_i32_0 = arith.constant 0 : i32
    %c0_i32_1 = arith.constant 0 : i32
    return %c0_i32, %c0_i32_0 : i32, i32
  }
  func.func @transform_4(%arg0: i32) -> (i32, i32) {
    %c0_i32 = arith.constant 0 : i32
    %c0_i32_0 = arith.constant 0 : i32
    %c0_i32_1 = arith.constant 0 : i32
    return %c0_i32, %c0_i32_0 : i32, i32
  }
  func.func @transform_5(%arg0: i32) -> (i32, i32) {
    %c0_i32 = arith.constant 0 : i32
    %c0_i32_0 = arith.constant 0 : i32
    return %c0_i32, %arg0 : i32, i32
  }
}

</mosaic_0001>

<bundles_post_ra>
// kernel: tpu_custom_call.1
= control target key start
LH: loop header
LB: loop body
LE: loop exit
PB: predicated region body
PF: predicated region fallthrough
CT: control target
= control target key end

     0   :  { %v372_v3 = vmov 1   ;;  %v373_v4 = vmov 0   ;;  %s528_s0 = inlined_call_operand.vmem [shape: f32[3,8], index: 0, kind: input, shape index: {}]   ;;  %s529_s1 = inlined_call_operand.vmem [shape: f32[64,3], index: 1, kind: input, shape index: {}]   ;;  %s530_s2 = inlined_call_operand.vmem [shape: f32[64,1], index: 2, kind: input, shape index: {}]   ;;  %s531_s3 = inlined_call_operand.vmem [shape: f32[64,1], index: 3, kind: input, shape index: {}]   ;;  %s532_s4 = inlined_call_operand.<no memory space> [shape: f32[1,1], index: 4, kind: input, shape index: {}]   ;;  %s533_s5 = inlined_call_operand.hbm [shape: f32[1,8], index: 5, kind: output, shape index: {}]  }
   0x1   :  { %v26_v0 = vld [vmem:[%s529_s1 + $0x20] sm:$0xff]  ;;  %v24_v1 = vld [vmem:[%s529_s1 + $0x10] sm:$0xff]  ;;  %v23_v2 = vld [vmem:[%s529_s1 + $0x8] sm:$0xff]  ;;  %338 = vset.pattern.permute.xlu0 %v372_v3  ;;  %336 = vset.pattern.permute.xlu2 %v373_v4 }
   0x2   :  { %335 = vset.pattern.permute.xlu1 %v373_v4  ;;  %70 = vperm.xlu2 %336, %v26_v0  }
   0x3   :  { %11 = vsyncpa [#allocation4], 0  ;;  %60 = vperm.xlu1 %335, %v24_v1   ;;  %102 = vperm.xlu0 %338, %v23_v2   ;;  %v27_v5 = vld [vmem:[%s529_s1 + $0x28] sm:$0xff]  ;;  %v25_v6 = vld [vmem:[%s529_s1 + $0x18] sm:$0xff]  ;;  %v374_v10 = vmov 2   ;;  %s375_s15 = smov [#allocation3]  }
   0x4   :  { %v28_v7 = vld [vmem:[%s529_s1 + $0x30] sm:$0xff]  ;;  %v29_v8 = vld [vmem:[%s529_s1 + $0x38] sm:$0xff]  ;;  %v22_v9 = vld [vmem:[%s529_s1] sm:$0xff]  ;;  %s320_s16 = sshll.u32 %s375_s15, 4  ;;  %s322_s19 = sshll.u32 %s533_s5, 4  ;;  %s321_s16 = int_to_ptr.vmem [resolvable:$true] %s320_s16  ;;  %s323_s19 = int_to_ptr.hbm [resolvable:$true] %s322_s19 }
   0x5   :  { %v31_v11 = vld [vmem:[%s530_s2 + $0x8] sm:$0xff]  ;;  %v30_v13 = vld [vmem:[%s530_s2] sm:$0xff]  ;;  %v41_v14 = vld [vmem:[%s531_s3 + $0x18] sm:$0xff] }
   0x6   :  { %v39_v12 = vld [vmem:[%s531_s3 + $0x8] sm:$0xff]  ;;  %v32_v15 = vld [vmem:[%s530_s2 + $0x10] sm:$0xff]  ;;  %v33_v16 = vld [vmem:[%s530_s2 + $0x18] sm:$0xff] }
   0x7   :  { %v37_v17 = vld [vmem:[%s530_s2 + $0x38] sm:$0xff]  ;;  %v34_v18 = vld [vmem:[%s530_s2 + $0x20] sm:$0xff]  ;;  %v40_v21 = vld [vmem:[%s531_s3 + $0x10] sm:$0xff] }
   0x8   :  { %v38_v19 = vld [vmem:[%s531_s3] sm:$0xff]  ;;  %v45_v20 = vld [vmem:[%s531_s3 + $0x38] sm:$0xff]  ;;  %v35_v23 = vld [vmem:[%s530_s2 + $0x28] sm:$0xff] }
   0x9   :  { %v36_v24 = vld [vmem:[%s530_s2 + $0x30] sm:$0xff]  ;;  %v42_v26 = vld [vmem:[%s531_s3 + $0x20] sm:$0xff]  ;;  %v43_v27 = vld [vmem:[%s531_s3 + $0x28] sm:$0xff] }
   0xa   :  { %75 = vperm.xlu2 %336, %v27_v5   ;;  %v44_v28 = vld [vmem:[%s531_s3 + $0x30] sm:$0xff]  ;;  %v47_v32 = vld [vmem:[%s528_s0] sm:$0x7] }
   0xb   :  { %65 = vperm.xlu1 %335, %v25_v6   ;;  %122 = vperm.xlu0 %338, %v28_v7   ;;  %v485_v34 = vperm.slane %v47_v32, 1  ;;  %v487_v35 = vperm.slane %v47_v32, 0  ;;  %v178_v63 = vperm.slane %v47_v32, 2 }
  0x12   :  { %337 = vset.pattern.permute.xlu2 %v372_v3 }
  0x13   :  { %85 = vperm.xlu1 %335, %v29_v8   ;;  %341 = vset.pattern.permute.xlu0 %v374_v10 }
  0x14   :  { %151 = vperm.xlu0 %341, %v23_v2   ;;  %98 = vperm.xlu2 %337, %v22_v9  }
  0x1b   :  { %339 = vset.pattern.permute.xlu1 %v372_v3 }
  0x1c   :  { %106 = vperm.xlu1 %339, %v24_v1   ;;  %171 = vperm.xlu0 %341, %v28_v7  }
  0x1d   :  { %110 = vperm.xlu2 %337, %v25_v6  }
  0x24   :  { %114 = vperm.xlu1 %339, %v26_v0   ;;  %343 = vset.pattern.permute.xlu0 %v373_v4 }
  0x25   :  { %118 = vperm.xlu2 %337, %v27_v5   ;;  %50 = vperm.xlu0 %343, %v22_v9  }
  0x2c   :  { %126 = vperm.xlu1 %339, %v29_v8  }
  0x2d   :  { %340 = vset.pattern.permute.xlu2 %v374_v10  ;;  %55 = vperm.xlu0 %343, %v23_v2  }
  0x2e   :  { %147 = vperm.xlu2 %340, %v22_v9  }
  0x34   :  { %342 = vset.pattern.permute.xlu1 %v374_v10 }
  0x35   :  { %155 = vperm.xlu1 %342, %v24_v1   ;;  %80 = vperm.xlu0 %343, %v28_v7  }
  0x36   :  { %159 = vperm.xlu2 %340, %v25_v6  }
  0x3d   :  { %163 = vperm.xlu1 %342, %v26_v0   ;;  %202 = vperm.xlu0 %343, %v31_v11  }
  0x3e   :  { %167 = vperm.xlu2 %340, %v27_v5  }
  0x45   :  { %175 = vperm.xlu1 %342, %v29_v8   ;;  %258 = vperm.xlu0 %343, %v39_v12  }
  0x46   :  { %344 = vset.pattern.permute.xlu2 %v373_v4 }
  0x47   :  { %197 = vperm.xlu2 %344, %v30_v13  }
  0x4d   :  { %345 = vset.pattern.permute.xlu1 %v373_v4  ;;  %268 = vperm.xlu0 %343, %v41_v14  }
  0x4e   :  { %207 = vperm.xlu1 %345, %v32_v15  }
  0x4f   :  { %212 = vperm.xlu2 %344, %v33_v16  }
  0x55   :  { %232 = vperm.xlu0 %343, %v37_v17  }
  0x56   :  { %217 = vperm.xlu1 %345, %v34_v18  }
  0x57   :  { %253 = vperm.xlu2 %344, %v38_v19  }
  0x5c   :  { %v463_v22 = vpop.permute.xlu2 %70 }
  0x5d   :  { %288 = vperm.xlu0 %343, %v45_v20  }
  0x5e   :  { %263 = vperm.xlu1 %345, %v40_v21  }
  0x5f   :  { %222 = vperm.xlu2 %344, %v35_v23   ;;  %v93_v23 = vmul.f32 %v487_v35, %v463_v22 }
  0x64   :  { %v471_v25 = vpop.permute.xlu2 %75 }
  0x66   :  { %227 = vperm.xlu1 %345, %v36_v24  }
  0x67   :  { %273 = vperm.xlu2 %344, %v42_v26  }
  0x6e   :  { %278 = vperm.xlu1 %345, %v43_v27   ;;  %v99_v29 = vpop.permute.xlu2 %98 }
  0x6f   :  { %283 = vperm.xlu2 %344, %v44_v28   ;;  %v130_v61 = vmul.f32 %v485_v34, %v99_v29 }
  0x75   :  { %v61_v30 = vpop.permute.xlu1 %60  ;;  %v103_v31 = vpop.permute.xlu0 %102 }
  0x76   :  { %v91_v47 = vmul.f32 %v487_v35, %v61_v30  ;;  %v131_v62 = vmul.f32 %v485_v34, %v103_v31 }
  0x77   :  { %v111_v33 = vpop.permute.xlu2 %110 }
  0x78   :  { %v133_v36 = vmul.f32 %v485_v34, %v111_v33 }
  0x7d   :  { %v66_v37 = vpop.permute.xlu1 %65  ;;  %v490_v38 = vpop.permute.xlu0 %122 }
  0x7e   :  { %v92_v39 = vmul.f32 %v487_v35, %v66_v37 }
  0x7f   :  { %v493_v40 = vpop.permute.xlu2 %118 }
  0x80   :  { %v141_v41 = vadd.f32 %v133_v36, %v92_v39  ;;  %v135_v22 = vmul.f32 %v485_v34, %v493_v40 }
  0x85   :  { %v495_v42 = vpop.permute.xlu1 %85 }
  0x86   :  { %v152_v43 = vpop.permute.xlu0 %151 }
  0x87   :  { %v180_v4 = vmul.f32 %v178_v63, %v152_v43 }
  0x88   :  { %v148_v44 = vpop.permute.xlu2 %147 }
  0x89   :  { %v179_v1 = vmul.f32 %v178_v63, %v148_v44 }
  0x8e   :  { %v107_v45 = vpop.permute.xlu1 %106  ;;  %v497_v46 = vpop.permute.xlu0 %171 }
  0x8f   :  { %v132_v48 = vmul.f32 %v485_v34, %v107_v45 }
  0x90   :  { %v160_v49 = vpop.permute.xlu2 %159 }
  0x91   :  { %v140_v50 = vadd.f32 %v132_v48, %v91_v47  ;;  %v182_v24 = vmul.f32 %v178_v63, %v160_v49  ;;  %v136_v49 = vmul.f32 %v485_v34, %v490_v38  ;;  %v96_v38 = vmul.f32 %v487_v35, %v495_v42 }
  0x93   :  { %v190_v31 = vadd.f32 %v182_v24, %v141_v41 }
  0x96   :  { %v115_v51 = vpop.permute.xlu1 %114 }
  0x97   :  { %v51_v52 = vpop.permute.xlu0 %50  ;;  %v134_v20 = vmul.f32 %v485_v34, %v115_v51 }
  0x98   :  { %v168_v53 = vpop.permute.xlu2 %167  ;;  %v89_v59 = vmul.f32 %v487_v35, %v51_v52  ;;  %v94_v52 = vmul.f32 %v487_v35, %v471_v25 }
  0x99   :  { %v142_v28 = vadd.f32 %v134_v20, %v93_v23 }
  0x9a   :  { %v138_v2 = vadd.f32 %v130_v61, %v89_v59  ;;  %v185_v61 = vmul.f32 %v178_v63, %v497_v46 }
  0x9c   :  { %v187_v7 = vadd.f32 %v179_v1, %v138_v2 }
  0x9e   :  { %v501_v54 = vpop.permute.xlu1 %126 }
  0x9f   :  { %v56_v55 = vpop.permute.xlu0 %55 }
  0xa0   :  { %v90_v60 = vmul.f32 %v487_v35, %v56_v55 }
  0xa1   :  { %v198_v56 = vpop.permute.xlu2 %197 }
  0xa2   :  { %v139_v3 = vadd.f32 %v131_v62, %v90_v60  ;;  %v235_v9 = vadd.f32 %v198_v56, %v187_v7  ;;  %v184_v56 = vmul.f32 %v178_v63, %v168_v53  ;;  %v137_v62 = vmul.f32 %v485_v34, %v501_v54 }
  0xa4   :  { %v188_v8 = vadd.f32 %v180_v4, %v139_v3  ;;  %v243_v12 = vmax.f32 %v235_v9, 0.0  ;;  %v145_v4 = vadd.f32 %v137_v62, %v96_v38 }
  0xa7   :  { %v156_v57 = vpop.permute.xlu1 %155  ;;  %v81_v58 = vpop.permute.xlu0 %80 }
  0xa8   :  { %v181_v21 = vmul.f32 %v178_v63, %v156_v57  ;;  %v95_v45 = vmul.f32 %v487_v35, %v81_v58  ;;  %v143_v58 = vadd.f32 %v135_v22, %v94_v52 }
  0xa9   :  { %v213_v0 = vpop.permute.xlu2 %212 }
  0xaa   :  { %v189_v29 = vadd.f32 %v181_v21, %v140_v50  ;;  %v238_v36 = vadd.f32 %v213_v0, %v190_v31  ;;  %v144_v57 = vadd.f32 %v136_v49, %v95_v45  ;;  %v192_v3 = vadd.f32 %v184_v56, %v143_v58 }
  0xac   :  { %v246_v47 = vmax.f32 %v238_v36, 0.0  ;;  %v193_v25 = vadd.f32 %v185_v61, %v144_v57 }
  0xaf   :  { %v164_v5 = vpop.permute.xlu1 %163  ;;  %v203_v6 = vpop.permute.xlu0 %202 }
  0xb0   :  { %v236_v10 = vadd.f32 %v203_v6, %v188_v8  ;;  %v183_v26 = vmul.f32 %v178_v63, %v164_v5 }
  0xb1   :  { %v254_v11 = vpop.permute.xlu2 %253 }
  0xb2   :  { %v244_v13 = vmax.f32 %v236_v10, 0.0  ;;  %v291_v16 = vmul.f32 %v254_v11, %v243_v12  ;;  %v191_v33 = vadd.f32 %v183_v26, %v142_v28 }
  0xb7   :  { %v176_v14 = vpop.permute.xlu1 %175  ;;  %v259_v15 = vpop.permute.xlu0 %258 }
  0xb8   :  { %v292_v17 = vmul.f32 %v259_v15, %v244_v13  ;;  %v186_v2 = vmul.f32 %v178_v63, %v176_v14 }
  0xb9   :  { %v223_v30 = vpop.permute.xlu2 %222 }
  0xba   :  { %v299_v18 = vadd.f32 %v292_v17, %v291_v16  ;;  %v240_v53 = vadd.f32 %v223_v30, %v192_v3  ;;  %v194_v6 = vadd.f32 %v186_v2, %v145_v4 }
  0xbc   :  { %v248_v7 = vmax.f32 %v240_v53, 0.0 }
  0xbf   :  { %v269_v39 = vpop.permute.xlu0 %268 }
  0xc0   :  { %v208_v19 = vpop.permute.xlu1 %207  ;;  %v294_v50 = vmul.f32 %v269_v39, %v246_v47 }
  0xc1   :  { %v237_v32 = vadd.f32 %v208_v19, %v189_v29  ;;  %v274_v55 = vpop.permute.xlu2 %273  ;;  %v312_v19 = vstv %s532_s4 }
  0xc3   :  { %v245_v43 = vmax.f32 %v237_v32, 0.0 }
  0xc7   :  { %v233_v0 = vpop.permute.xlu0 %232 }
  0xc8   :  { %v218_v27 = vpop.permute.xlu1 %217  ;;  %v242_v8 = vadd.f32 %v233_v0, %v194_v6 }
  0xc9   :  { %v239_v37 = vadd.f32 %v218_v27, %v191_v33  ;;  %v284_v11 = vpop.permute.xlu2 %283 }
  0xca   :  { %v250_v54 = vmax.f32 %v242_v8, 0.0 }
  0xcb   :  { %v247_v48 = vmax.f32 %v239_v37, 0.0 }
  0xcd   :  { %v295_v59 = vmul.f32 %v274_v55, %v247_v48 }
  0xcf   :  { %v289_v34 = vpop.permute.xlu0 %288 }
  0xd0   :  { %v264_v44 = vpop.permute.xlu1 %263  ;;  %v298_v15 = vmul.f32 %v289_v34, %v250_v54 }
  0xd1   :  { %v293_v51 = vmul.f32 %v264_v44, %v245_v43 }
  0xd3   :  { %v300_v41 = vadd.f32 %v299_v18, %v293_v51 }
  0xd5   :  { %v301_v60 = vadd.f32 %v300_v41, %v294_v50 }
  0xd7   :  { %v302_v40 = vadd.f32 %v301_v60, %v295_v59 }
  0xd8   :  { %v228_v1 = vpop.permute.xlu1 %227 }
  0xd9   :  { %v241_v5 = vadd.f32 %v228_v1, %v193_v25 }
  0xdb   :  { %v249_v9 = vmax.f32 %v241_v5, 0.0 }
  0xdd   :  { %v297_v12 = vmul.f32 %v284_v11, %v249_v9 }
  0xe0   :  { %v279_v46 = vpop.permute.xlu1 %278 }
  0xe1   :  { %v296_v10 = vmul.f32 %v279_v46, %v248_v7 }
  0xe3   :  { %v303_v13 = vadd.f32 %v302_v40, %v296_v10 }
  0xe5   :  { %v304_v16 = vadd.f32 %v303_v13, %v297_v12 }
  0xe7   :  { %v305_v35 = vadd.f32 %v304_v16, %v298_v15 }
  0xe9   :  { %v306_v42 = vrot.slane %v305_v35, 4 }
  0xeb   :  { %v307_v63 = vadd.f32 %v306_v42, %v305_v35 }
  0xed   :  { %v308_v14 = vrot.slane %v307_v63, 2 }
  0xef   :  { %v309_v17 = vadd.f32 %v308_v14, %v307_v63 }
  0xf1   :  { %v310_v18 = vrot.slane %v309_v17, 1 }
  0xf3   :  { %v311_v20 = vadd.f32 %v310_v18, %v309_v17 }
  0xf5   :  { %v313_v21 = vadd.f32 %v312_v19, %v311_v20 }
  0xf7   :  { %314 = vst [vmem:[#allocation3] sm:$0x1] %v313_v21 }
  0xf8   :  { %325 = dma.vmem_to_hbm [thread:$0]  %s321_s16, 16, %s323_s19, [#allocation4]  }
  0xf9   :  { %370 = dma.done.wait [#allocation4], 16  }
  0xfa   :  { %371 = vsyncadd [#allocation4], 4294967280 }
  0xfb   :  { %330 = vsyncpa [#allocation4], 1 }

</bundles_post_ra>
